<compile_context>
chip_gen: v7x
topology: tpu7x:2x2x1
jax: 0.10.0
libtpu: 0.0.40
codegen_flags: <defaults>
</compile_context>

<pallas_src>
import functools

import jax
import jax.numpy as jnp
from jax.experimental import pallas as pl
from jax.experimental.pallas import tpu as pltpu


def _dice_stats_kernel(p_ref, y_ref, w_ref, out_ref, acc_ref, *,
                       softmax, s_total, tile_m):
    i = pl.program_id(1)

    @pl.when(i == 0)
    def _():
        acc_ref[...] = jnp.zeros_like(acc_ref)

    p = p_ref[...].astype(jnp.float32)   # [C, TM]
    y = y_ref[...].astype(jnp.float32)   # [C, TM]
    w = w_ref[...].astype(jnp.float32)   # [1, TM]

    if s_total % tile_m != 0:
        # Ragged last tile: lanes past S hold unspecified data; zero them so
        # they contribute nothing to any statistic (and softmax stays finite).
        lane = jax.lax.broadcasted_iota(jnp.int32, (1, tile_m), 1)
        valid = (i * tile_m + lane) < s_total            # [1, TM]
        w = jnp.where(valid, w, 0.0)
        p = jnp.where(valid, p, 0.0)
        y = jnp.where(valid, y, 0.0)

    if softmax:
        # softmax over the class (sublane) axis, matching nn.Softmax(dim=1)
        m = jnp.max(p, axis=0, keepdims=True)
        e = jnp.exp(p - m)
        p = e / jnp.sum(e, axis=0, keepdims=True)

    pw = p * w
    wy = w * y
    s_pwy = jnp.sum(pw * y, axis=1, keepdims=True)   # [C, 1]  tp (pixel-weighted)
    s_wy = jnp.sum(wy, axis=1, keepdims=True)        # [C, 1]  tp + fn
    s_pw = jnp.sum(pw, axis=1, keepdims=True)        # [C, 1]  tp + fp

    acc_ref[:, 0:1] += s_pwy
    acc_ref[:, 1:2] += s_wy
    acc_ref[:, 2:3] += s_pw

    @pl.when(i == pl.num_programs(1) - 1)
    def _():
        out_ref[...] = acc_ref[...]


def dice_loss(predict, soft_y, img_w, pix_w, cls_w, softmax=True,
              tile_m=32768):
    if isinstance(predict, (list, tuple)):
        predict = predict[0]
    tensor_dim = predict.ndim
    assert tensor_dim in (4, 5), "expected NCHW or NCDHW"
    n, c = predict.shape[0], predict.shape[1]
    s = 1
    for d in predict.shape[2:]:
        s *= d

    # Free contiguous reshapes only -- no transpose, no pad, no dtype cast.
    p3 = predict.reshape(n, c, s)
    y3 = soft_y.reshape(n, c, s)
    w3 = pix_w.reshape(n, 1, s)

    def round_up(x, m):
        return (x + m - 1) // m * m

    # Largest lane tile (multiple of 128) with double-buffered inputs <= ~12 MiB.
    col_bytes = (c * (jnp.dtype(p3.dtype).itemsize + jnp.dtype(y3.dtype).itemsize)
                 + jnp.dtype(w3.dtype).itemsize)
    vmem_budget = 12 * 1024 * 1024
    tm_cap = max(128, (vmem_budget // (2 * col_bytes)) // 128 * 128)
    tm = min(tile_m, tm_cap, round_up(s, 128))
    tm = max(128, (tm // 128) * 128)
    num_tiles = (s + tm - 1) // tm

    kernel = functools.partial(_dice_stats_kernel, softmax=softmax,
                               s_total=s, tile_m=tm)
    stats = pl.pallas_call(
        kernel,
        out_shape=jax.ShapeDtypeStruct((n, c, 3), jnp.float32),
        grid_spec=pltpu.PrefetchScalarGridSpec(
            num_scalar_prefetch=0,
            grid=(n, num_tiles),
            in_specs=[
                pl.BlockSpec((None, c, tm), lambda b, i: (b, 0, i)),
                pl.BlockSpec((None, c, tm), lambda b, i: (b, 0, i)),
                pl.BlockSpec((None, 1, tm), lambda b, i: (b, 0, i)),
            ],
            out_specs=pl.BlockSpec((None, c, 3), lambda b, i: (b, 0, 0)),
            scratch_shapes=[pltpu.VMEM((c, 3), jnp.float32)],
        ),
        compiler_params=pltpu.CompilerParams(
            dimension_semantics=("parallel", "arbitrary"),
            vmem_limit_bytes=32 * 1024 * 1024,
        ),
    )(p3, y3, w3)

    # Tiny JAX epilogue: fold in image weights (constant per image, so it
    # commutes with the pixel sums), derive fn/fp, class-weighted dice mean.
    # tn / accuracy / sensitivity / specificity / precision never affect the
    # returned loss in the PyTorch module, so they are not computed.
    img_w_f = img_w.astype(jnp.float32).reshape(n, 1)
    tp = jnp.sum(stats[:, :, 0] * img_w_f, axis=0)
    s_wy = jnp.sum(stats[:, :, 1] * img_w_f, axis=0)
    s_pw = jnp.sum(stats[:, :, 2] * img_w_f, axis=0)
    fn = s_wy - tp
    fp = s_pw - tp
    eps = 1e-10
    dice = (2.0 * tp + eps) / (2.0 * tp + fn + fp + eps)
    cls_w_f = cls_w.astype(jnp.float32)
    average_dice = jnp.sum(dice * cls_w_f) / jnp.sum(cls_w_f)
    return 1.0 - average_dice


def dice_loss_ref(predict, soft_y, img_w, pix_w, cls_w, softmax=True):
    """Pure-JAX reference matching the PyTorch forward."""
    tensor_dim = predict.ndim
    n, c = predict.shape[0], predict.shape[1]
    if softmax:
        predict = jax.nn.softmax(predict.astype(jnp.float32), axis=1)
    img_w_b = img_w.reshape((n,) + (1,) * (tensor_dim - 1))
    pix_w = pix_w * img_w_b

    def to2d(x):
        perm = (0,) + tuple(range(2, x.ndim)) + (1,)
        return jnp.transpose(x, perm).reshape(-1, x.shape[1])

    p = to2d(predict).astype(jnp.float32)       # [M, C]
    y = to2d(soft_y).astype(jnp.float32)        # [M, C]
    w = to2d(pix_w).astype(jnp.float32)         # [M, 1]
    tp = jnp.sum(p * y * w, axis=0)
    fn = jnp.sum((1 - p) * y * w, axis=0)
    fp = jnp.sum(p * (1 - y) * w, axis=0)
    eps = 1e-10
    dice = (2 * tp + eps) / (2 * tp + fn + fp + eps)
    return 1.0 - jnp.sum(dice * cls_w) / jnp.sum(cls_w)


if __name__ == "__main__":
    key = jax.random.PRNGKey(0)
    k1, k2, k3, k4, k5 = jax.random.split(key, 5)

    N, C, H, W = 2, 4, 16, 16
    predict = jax.random.normal(k1, (N, C, H, W), dtype=jnp.float32)
    labels = jax.random.randint(k2, (N, H, W), 0, C)
    soft_y = jnp.transpose(
        jax.nn.one_hot(labels, C, dtype=jnp.float32), (0, 3, 1, 2))  # NCHW one-hot
    pix_w = jax.random.uniform(k3, (N, 1, H, W), minval=0.5, maxval=1.5)
    img_w = jax.random.uniform(k4, (N,), minval=0.5, maxval=1.5)
    cls_w = jax.random.uniform(k5, (C,), minval=0.5, maxval=1.5)

    loss = dice_loss(predict, soft_y, img_w, pix_w, cls_w, softmax=True)
    loss = jax.block_until_ready(loss)

    ref = dice_loss_ref(predict, soft_y, img_w, pix_w, cls_w, softmax=True)
    assert jnp.allclose(loss, ref, rtol=1e-5, atol=1e-6), (loss, ref)

    print("KERNEL_OK")
</pallas_src>

<mosaic_0001>
module attributes {stable_mosaic.version = 11 : i64} {
  func.func @_dice_stats_kernel(%arg0: i32, %arg1: i32, %arg2: memref<1x4x256xf32, #tpu.memory_space<vmem>>, %arg3: memref<1x4x256xf32, #tpu.memory_space<vmem>>, %arg4: memref<1x1x256xf32, #tpu.memory_space<vmem>>, %arg5: memref<1x4x3xf32, #tpu.memory_space<vmem>>, %arg6: memref<4x3xf32, #tpu.memory_space<vmem>>) attributes {dimension_semantics = [#tpu.dimension_semantics<parallel>, #tpu.dimension_semantics<arbitrary>], iteration_bounds = array<i64: 2, 1>, scalar_prefetch = 0 : i64, scratch_operands = 1 : i64, tpu.core_type = #tpu.core_type<tc>, window_params = [{transform_indices = @transform_0, window_bounds = array<i64: 1, 4, 256>}, {transform_indices = @transform_1, window_bounds = array<i64: 1, 4, 256>}, {transform_indices = @transform_2, window_bounds = array<i64: 1, 1, 256>}, {transform_indices = @transform_3, window_bounds = array<i64: 1, 4, 3>}]} {
    %c0_i32 = arith.constant 0 : i32
    %0 = arith.cmpi eq, %arg1, %c0_i32 : i32
    %1 = arith.extui %0 : i1 to i32
    %c0_i32_0 = arith.constant 0 : i32
    %2 = arith.cmpi ne, %1, %c0_i32_0 : i32
    scf.if %2 {
      %cst_25 = arith.constant 0.000000e+00 : f32
      %41 = vector.broadcast %cst_25 : f32 to vector<4x3xf32>
      %c0_26 = arith.constant 0 : index
      %c0_27 = arith.constant 0 : index
      %42 = vector.load %arg6[%c0_26, %c0_27] : memref<4x3xf32, #tpu.memory_space<vmem>>, vector<4x3xf32>
      tpu.vector_store %arg6[%c0_26, %c0_27], %41 {strides = array<i32>} : memref<4x3xf32, #tpu.memory_space<vmem>>, vector<4x3xf32>,
    } else {
    }
    %c0 = arith.constant 0 : index
    %c0_1 = arith.constant 0 : index
    %c0_2 = arith.constant 0 : index
    %3 = vector.load %arg2[%c0, %c0_1, %c0_2] : memref<1x4x256xf32, #tpu.memory_space<vmem>>, vector<1x4x256xf32>
    %4 = vector.shape_cast %3 : vector<1x4x256xf32> to vector<4x256xf32>
    %c0_3 = arith.constant 0 : index
    %c0_4 = arith.constant 0 : index
    %c0_5 = arith.constant 0 : index
    %5 = vector.load %arg3[%c0_3, %c0_4, %c0_5] : memref<1x4x256xf32, #tpu.memory_space<vmem>>, vector<1x4x256xf32>
    %6 = vector.shape_cast %5 : vector<1x4x256xf32> to vector<4x256xf32>
    %c0_6 = arith.constant 0 : index
    %c0_7 = arith.constant 0 : index
    %c0_8 = arith.constant 0 : index
    %7 = vector.load %arg4[%c0_6, %c0_7, %c0_8] : memref<1x1x256xf32, #tpu.memory_space<vmem>>, vector<1x1x256xf32>
    %8 = vector.shape_cast %7 : vector<1x1x256xf32> to vector<1x256xf32>
    %cst = arith.constant dense<0xFF800000> : vector<256xf32>
    %9 = vector.multi_reduction <maximumf>, %4, %cst [0] : vector<4x256xf32> to vector<256xf32>
    %10 = vector.shape_cast %9 : vector<256xf32> to vector<1x256xf32>
    %11 = vector.broadcast %10 : vector<1x256xf32> to vector<4x256xf32>
    %12 = arith.subf %4, %11 : vector<4x256xf32>
    %13 = math.exp %12 : vector<4x256xf32>
    %cst_9 = arith.constant dense<0.000000e+00> : vector<256xf32>
    %14 = vector.multi_reduction <add>, %13, %cst_9 [0] : vector<4x256xf32> to vector<256xf32>
    %15 = vector.shape_cast %14 : vector<256xf32> to vector<1x256xf32>
    %16 = vector.broadcast %15 : vector<1x256xf32> to vector<4x256xf32>
    %17 = arith.divf %13, %16 : vector<4x256xf32>
    %18 = vector.broadcast %8 : vector<1x256xf32> to vector<4x256xf32>
    %19 = arith.mulf %17, %18 : vector<4x256xf32>
    %20 = vector.broadcast %8 : vector<1x256xf32> to vector<4x256xf32>
    %21 = arith.mulf %20, %6 : vector<4x256xf32>
    %22 = arith.mulf %19, %6 : vector<4x256xf32>
    %cst_10 = arith.constant dense<0.000000e+00> : vector<4xf32>
    %23 = vector.multi_reduction <add>, %22, %cst_10 [1] : vector<4x256xf32> to vector<4xf32>
    %24 = vector.shape_cast %23 : vector<4xf32> to vector<4x1xf32>
    %cst_11 = arith.constant dense<0.000000e+00> : vector<4xf32>
    %25 = vector.multi_reduction <add>, %21, %cst_11 [1] : vector<4x256xf32> to vector<4xf32>
    %26 = vector.shape_cast %25 : vector<4xf32> to vector<4x1xf32>
    %cst_12 = arith.constant dense<0.000000e+00> : vector<4xf32>
    %27 = vector.multi_reduction <add>, %19, %cst_12 [1] : vector<4x256xf32> to vector<4xf32>
    %28 = vector.shape_cast %27 : vector<4xf32> to vector<4x1xf32>
    %c0_13 = arith.constant 0 : index
    %c0_14 = arith.constant 0 : index
    %29 = vector.load %arg6[%c0_13, %c0_14] : memref<4x3xf32, #tpu.memory_space<vmem>>, vector<4x1xf32>
    %30 = arith.addf %29, %24 : vector<4x1xf32>
    %c0_15 = arith.constant 0 : index
    %c0_16 = arith.constant 0 : index
    %31 = vector.load %arg6[%c0_15, %c0_16] : memref<4x3xf32, #tpu.memory_space<vmem>>, vector<4x1xf32>
    tpu.vector_store %arg6[%c0_15, %c0_16], %30 {strides = array<i32>} : memref<4x3xf32, #tpu.memory_space<vmem>>, vector<4x1xf32>,
    %c0_17 = arith.constant 0 : index
    %c1 = arith.constant 1 : index
    %32 = vector.load %arg6[%c0_17, %c1] : memref<4x3xf32, #tpu.memory_space<vmem>>, vector<4x1xf32>
    %33 = arith.addf %32, %26 : vector<4x1xf32>
    %c0_18 = arith.constant 0 : index
    %c1_19 = arith.constant 1 : index
    %34 = vector.load %arg6[%c0_18, %c1_19] : memref<4x3xf32, #tpu.memory_space<vmem>>, vector<4x1xf32>
    tpu.vector_store %arg6[%c0_18, %c1_19], %33 {strides = array<i32>} : memref<4x3xf32, #tpu.memory_space<vmem>>, vector<4x1xf32>,
    %c0_20 = arith.constant 0 : index
    %c2 = arith.constant 2 : index
    %35 = vector.load %arg6[%c0_20, %c2] : memref<4x3xf32, #tpu.memory_space<vmem>>, vector<4x1xf32>
    %36 = arith.addf %35, %28 : vector<4x1xf32>
    %c0_21 = arith.constant 0 : index
    %c2_22 = arith.constant 2 : index
    %37 = vector.load %arg6[%c0_21, %c2_22] : memref<4x3xf32, #tpu.memory_space<vmem>>, vector<4x1xf32>
    tpu.vector_store %arg6[%c0_21, %c2_22], %36 {strides = array<i32>} : memref<4x3xf32, #tpu.memory_space<vmem>>, vector<4x1xf32>,
    %c0_i32_23 = arith.constant 0 : i32
    %38 = arith.cmpi eq, %arg1, %c0_i32_23 : i32
    %39 = arith.extui %38 : i1 to i32
    %c0_i32_24 = arith.constant 0 : i32
    %40 = arith.cmpi ne, %39, %c0_i32_24 : i32
    scf.if %40 {
      %c0_25 = arith.constant 0 : index
      %c0_26 = arith.constant 0 : index
      %41 = vector.load %arg6[%c0_25, %c0_26] : memref<4x3xf32, #tpu.memory_space<vmem>>, vector<4x3xf32>
      %c0_27 = arith.constant 0 : index
      %c0_28 = arith.constant 0 : index
      %c0_29 = arith.constant 0 : index
      %42 = vector.load %arg5[%c0_27, %c0_28, %c0_29] : memref<1x4x3xf32, #tpu.memory_space<vmem>>, vector<1x4x3xf32>
      %43 = vector.shape_cast %42 : vector<1x4x3xf32> to vector<4x3xf32>
      %44 = vector.shape_cast %41 : vector<4x3xf32> to vector<1x4x3xf32>
      tpu.vector_store %arg5[%c0_27, %c0_28, %c0_29], %44 {strides = array<i32>} : memref<1x4x3xf32, #tpu.memory_space<vmem>>, vector<1x4x3xf32>,
    } else {
    }
    return
  }
  func.func @transform_0(%arg0: i32, %arg1: i32) -> (i32, i32, i32) {
    %c0_i32 = arith.constant 0 : i32
    %c0_i32_0 = arith.constant 0 : i32
    return %arg0, %c0_i32, %arg1 : i32, i32, i32
  }
  func.func @transform_1(%arg0: i32, %arg1: i32) -> (i32, i32, i32) {
    %c0_i32 = arith.constant 0 : i32
    %c0_i32_0 = arith.constant 0 : i32
    return %arg0, %c0_i32, %arg1 : i32, i32, i32
  }
  func.func @transform_2(%arg0: i32, %arg1: i32) -> (i32, i32, i32) {
    %c0_i32 = arith.constant 0 : i32
    %c0_i32_0 = arith.constant 0 : i32
    return %arg0, %c0_i32, %arg1 : i32, i32, i32
  }
  func.func @transform_3(%arg0: i32, %arg1: i32) -> (i32, i32, i32) {
    %c0_i32 = arith.constant 0 : i32
    %c0_i32_0 = arith.constant 0 : i32
    %c0_i32_1 = arith.constant 0 : i32
    return %arg0, %c0_i32, %c0_i32_0 : i32, i32, i32
  }
}

</mosaic_0001>

<bundles_post_ra>
// kernel: tpu_custom_call.1
= control target key start
LH: loop header
LB: loop body
LE: loop exit
PB: predicated region body
PF: predicated region fallthrough
CT: control target
= control target key end

     0   :  { %8 = vsyncpa [#allocation4], 0  ;;  %s932_s0 = inlined_call_operand.hbm [shape: f32[2,4,256], index: 0, kind: input, shape index: {}]   ;;  %s933_s1 = inlined_call_operand.hbm [shape: f32[2,4,256], index: 1, kind: input, shape index: {}]   ;;  %s934_s2 = inlined_call_operand.vmem [shape: f32[2,1,256], index: 2, kind: input, shape index: {}]   ;;  %s935_s3 = inlined_call_operand.vmem [shape: f32[2,4,3], index: 3, kind: output, shape index: {}]  }
   0x1   :  { %10 = vsyncpa [#allocation4 + $0x1], 0 }
   0x2   :  { %11 = vsyncpa [#allocation6], 0 }
   0x3   :  { %13 = vsyncpa [#allocation6 + $0x1], 0  ;;  %s738_s12 = smov 0   ;;  %s740_s13 = smov 0  }
   0x4   :  { %s742_s14 = smov 0   ;;  %s744_s15 = smov 0  }
   0x5   :  { %s746_s16 = smov 0   ;;  %s748_s17 = smov 0  }
   0x6 LB: > { %s513_s18 = sadd.s32 4294967295, %s713_s17   ;;  %s31_s19 = sadd.s32 1, %s709_s16  ;;  %s713_s17 = sphi %s748_s17, %s19_s17   ;;  %s709_s16 = sphi %s746_s16, %s949_s16   ;;  %s705_s15 = sphi %s744_s15, %s948_s15   ;;  %s701_s14 = sphi %s742_s14, %s947_s14   ;;  %s697_s13 = sphi %s740_s13, %s946_s13   ;;  %s693_s12 = sphi %s738_s12, %s945_s12  }
   0x7   : > { %p33_p0 = scmp.ge.s32.totalorder %s31_s19, 2  ;;  %s40_s20 = sadd.s32 1, %s701_s14 }
   0x8   : > { %p47_p1 = scmp.ne.s32.totalorder %s701_s14, %s697_s13  ;;  %p48_p2 = scmp.eq.s32.totalorder %s713_s17, 0 }
   0x9   : > { %s951_s19 = smov (%p33_p0, %s31_s19), 0  ;;  %p53_p4 = scmp.ne.s32.totalorder %s697_s13, %s693_s12 }
   0xa   : > { %p774_p3 = por %p48_p2, %p47_p1  ;;  %s35_s22 = ssub.s32 %s709_s16, %s951_s19 }
   0xb   : > { %p54_p5 = scmp.eq.s32.totalorder %s513_s18, 0  ;;  %p38_p6 = scmp.eq.s32.totalorder %s35_s22, 0 }
   0xc   : > { %p543_p8 = scmp.lt.s32.totalorder %s713_s17, 2  ;;  %s790_s25 = sand.u32 1, %s701_s14  }
   0xd   : > { %p781_p7 = por %p54_p5, %p53_p4  ;;  %s530_s26 = sshll.u32 %s709_s16, 7 }
   0xe   : > { %s787_s24 = scalar_select %p38_p6, %s701_s14, %s40_s20  }
   0xf   : > { %s938_s23 = scalar_select %p781_p7, 1, 0 }
  0x10   : > { %s517_s27 = sshll.u32 %s790_s25, 3  ;;  %s799_s30 = scalar_lea.hbm %s932_s0, %s530_s26 }
  0x11   : > { %s163_s4 = scalar_lea.vmem [#allocation3], %s517_s27  ;;  %p805_p9 = pnand %p543_p8, %p774_p3 }
  0x12   : > { %s173_s5 = sshll.u32 %s163_s4, 4  ;;  %s160_s7 = scalar_lea.sflag [#allocation4], %s790_s25  ;;  %s809_s5 = int_to_ptr.vmem [resolvable:$true] %s173_s5 }
  0x13   : > { %s599_s8 = scalar_lea.hbm %s799_s30, 128  ;;  %p601_p13 = pneg %p805_p9 }
  0x14   : > { %p600_p12 = scmp.ne.s32.totalorder %s799_s30, %s599_s8  ;;  %s604_s11 = scalar_lea.hbm %s932_s0, 256 }
  0x15   : > { %p605_p2 = scmp.lt.u32.totalorder %s799_s30, %s932_s0  ;;  %p606_p3 = scmp.lt.u32.totalorder %s604_s11, %s599_s8 }
  0x16   : > { %p602_p0 = pnand %p601_p13, %p600_p12  ;;  %p608_p5 = scmp.lt.u32.totalorder %s599_s8, %s799_s30 }
  0x17   : > { %p607_p4 = por %p606_p3, %p605_p2 }
  0x18   : > { %p603_p1 = pneg %p602_p0 }
  0x19   : > { %p609_p6 = por %p608_p5, %p607_p4 }
  0x1b   : > { %p610_p8 = pnand %p609_p6, %p603_p1 }
  0x1d   : > { %613 = shalt.err (!%p610_p8)
}
  0x1e   : > { %s614_s20 = scalar_lea.vmem %s809_s5, 128  ;;  %s715_s21 = smov [#allocation3]  }
  0x1f   : > { %p615_p12 = scmp.ne.s32.totalorder %s809_s5, %s614_s20  ;;  %s619_s22 = sshll.u32 %s715_s21, 4  ;;  %s620_s22 = int_to_ptr.vmem [resolvable:$false] %s619_s22 }
  0x20   : > { %s621_s28 = scalar_lea.vmem %s620_s22, 256  ;;  %p622_p11 = scmp.lt.s32.totalorder %s809_s5, %s620_s22 }
  0x21   : > { %p617_p0 = pnand %p615_p12, %p601_p13  ;;  %p623_p2 = scmp.lt.s32.totalorder %s621_s28, %s614_s20 }
  0x23   : > { %p618_p10 = pneg %p617_p0  ;;  %p624_p3 = por %p623_p2, %p622_p11 }
  0x25   : > { %p625_p4 = pnand %p624_p3, %p618_p10 }
  0x27   : > { %628 = shalt.err (!%p625_p4)
}
  0x28   : > { %539 = dma.hbm_to_vmem [thread:$0]  (!%p805_p9), %s799_s30, 128, %s809_s5, %s160_s7  }
  0x29   : > { %p940_p1 = scmp.lt.s32.totalorder %s713_s17, 3  ;;  %p941_p5 = scmp.ge.s32.totalorder %s713_s17, 1 }
  0x2a   : > { %s852_s9 = scalar_lea.hbm %s933_s1, %s530_s26  ;;  %s184_s10 = scalar_lea.vmem [#allocation5], %s517_s27 }
  0x2b   : > { %p843_p6 = pnand %p941_p5, %p940_p1  ;;  %s194_s11 = sshll.u32 %s184_s10, 4  ;;  %s195_s11 = int_to_ptr.vmem [resolvable:$true] %s194_s11 }
  0x2c   : > { %s181_s30 = scalar_lea.sflag [#allocation6], %s790_s25  ;;  %s629_s5 = scalar_lea.hbm %s852_s9, 128 }
  0x2d   : > { %s942_s29 = scalar_select %p843_p6, 1, 0 }
  0x2e   : > { %p630_p10 = scmp.ne.s32.totalorder %s852_s9, %s629_s5  ;;  %s634_s26 = scalar_lea.hbm %s933_s1, 256 }
  0x2f   : > { %p635_p12 = scmp.lt.u32.totalorder %s852_s9, %s933_s1  ;;  %p636_p0 = scmp.lt.u32.totalorder %s634_s26, %s629_s5 }
  0x30   : > { %p632_p11 = pnand %p630_p10, %p601_p13  ;;  %p638_p3 = scmp.lt.u32.totalorder %s629_s5, %s852_s9 }
  0x31   : > { %p637_p2 = por %p636_p0, %p635_p12 }
  0x32   : > { %p633_p8 = pneg %p632_p11 }
  0x33   : > { %p639_p4 = por %p638_p3, %p637_p2 }
  0x35   : > { %p640_p1 = pnand %p639_p4, %p633_p8 }
  0x37   : > { %643 = shalt.err (!%p640_p1)
}
  0x38   : > { %s644_s25 = scalar_lea.vmem %s195_s11, 128  ;;  %s716_s27 = smov [#allocation5]  }
  0x39   : > { %p645_p5 = scmp.ne.s32.totalorder %s195_s11, %s644_s25  ;;  %s649_s21 = sshll.u32 %s716_s27, 4  ;;  %s650_s21 = int_to_ptr.vmem [resolvable:$false] %s649_s21 }
  0x3a   : > { %s651_s22 = scalar_lea.vmem %s650_s21, 256  ;;  %p652_p7 = scmp.lt.s32.totalorder %s195_s11, %s650_s21 }
  0x3b   : > { %p647_p10 = pnand %p645_p5, %p601_p13  ;;  %p653_p6 = scmp.lt.s32.totalorder %s651_s22, %s644_s25 }
  0x3d   : > { %p648_p11 = pneg %p647_p10  ;;  %p654_p0 = por %p653_p6, %p652_p7 }
  0x3f   : > { %p655_p12 = pnand %p654_p0, %p648_p11 }
  0x41   : > { %658 = shalt.err (!%p655_p12)
}
  0x42   : > { %542 = dma.hbm_to_vmem [thread:$0]  (!%p805_p9), %s852_s9, 128, %s195_s11, %s181_s30  }
  0x43   : > { %p943_p8 = scmp.ne.s32.totalorder %s942_s29, 0 }
  0x44   : > { %s217_s28 = sand.u32 (!%p943_p8), 1, %s697_s13   ;;  %p944_p13 = scmp.ne.s32.totalorder (!%p943_p8), %s938_s23, 0 }
  0x45   : > { %215 = sbr.rel (%p943_p8) target bundleno = 324 (0x144), region = 32  ;;  %s524_s4 = sshll.u32 (!%p943_p8), %s217_s28, 3 }
  0x46   : > { %s218_s8 = scalar_lea.sflag (!%p943_p8), [#allocation4], %s217_s28  ;;  %s221_s10 = scalar_lea.vmem (!%p943_p8), [#allocation3], %s524_s4 }
  0x4c   : > { %684 = dma.done.wait (%p944_p13), %s218_s8, 128  }
  0x4d   : > { %686 = vsyncadd (%p944_p13), %s218_s8, 4294967168  ;;  %s227_s5 = scalar_lea.sflag [#allocation6], %s217_s28  ;;  %s883_s7 = scalar_lea.vmem [#allocation5], %s524_s4 }
  0x4e   : > { %688 = dma.done.wait (%p944_p13), %s227_s5, 128  }
  0x4f   : > { %690 = vsyncadd (%p944_p13), %s227_s5, 4294967168  ;;  %vm284_vm0 = vcmask 19456   ;;  %v717_v0 = vmov 0.0   ;;  %vm292_vm1 = vcmask 1043456   ;;  %v286_v1 = vld [vmem:[%s221_s10] sm:$0xff]  ;;  %p268_p7 = scmp.lt.s32.totalorder %s705_s15, 1  ;;  %v338_v33 = vlaneseq }
  0x50   : > { %285 = vst.msk [vmem:[#allocation2] sm:$0xf] %vm284_vm0, %v717_v0  ;;  %v290_v2 = vcombine.high %v286_v1, %v286_v1  ;;  %v293_v3 = vsel %vm292_vm1, %v286_v1, -inf  ;;  %v287_v46 = vld [vmem:[%s883_s7] sm:$0xff]  ;;  %vm380_vm2 = vcmask 3072   ;;  %vm384_vm3 = vcmask 11272  }
  0x51   : > { %v294_v4 = vrot.slane %v293_v3, 4  ;;  %s953_s15 = smov (!%p268_p7, %s705_s15), 1  ;;  %v339_v37 = vshrl.u32 %v338_v33, 7  ;;  %v352_v48 = vcombine.high %v287_v46, %v287_v46  ;;  %vm388_vm4 = vcmask 19472  }
  0x52   : > { %v300_v5 = vsel %vm292_vm1, %v290_v2, -inf  ;;  %s526_s23 = sshll.u32 %s953_s15, 1  ;;  %s527_s11 = sshll.u32 %s953_s15, 2 }
  0x53   : > { %v295_v6 = vmax.f32 %v293_v3, %v294_v4  ;;  %v301_v7 = vrot.slane %v300_v5, 4  ;;  %s274_s9 = scalar_lea.vmem %s934_s2, %s526_s23  ;;  %v340_v39 = vsub.s32 0, %v339_v37  ;;  %v344_v40 = vsub.s32 1, %v339_v37  ;;  %s279_s26 = scalar_lea.vmem %s935_s3, %s527_s11 }
  0x54   : > { %v288_v41 = vld [vmem:[%s274_s9] sm:$0x3] }
  0x55   : > { %v296_v8 = vrot.slane %v295_v6, 2  ;;  %v302_v9 = vmax.f32 %v300_v5, %v301_v7  ;;  %v341_v42 = vrot.slane %v288_v41, %v340_v39  ;;  %v345_v43 = vrot.slane %v288_v41, %v344_v40 }
  0x57   : > { %v297_v10 = vmax.f32 %v295_v6, %v296_v8  ;;  %v303_v11 = vrot.slane %v302_v9, 2  ;;  %v348_v44 = vcombine.low %v341_v42, %v345_v43  ;;  %v354_v50 = vmul.f32 %v341_v42, %v287_v46  ;;  %v378_v0 = vld [vmem:[#allocation2] sm:$0xf] }
  0x58   : > { %v355_v52 = vmul.f32 %v352_v48, %v345_v43 }
  0x59   : > { %v298_v12 = vrot.slane %v297_v10, 1  ;;  %v304_v13 = vmax.f32 %v302_v9, %v303_v11  ;;  %v365_v60 = vsel %vm292_vm1, %v354_v50, 0.0 }
  0x5a   : > { %v366_v61 = vsel %vm292_vm1, %v355_v52, 0.0 }
  0x5b   : > { %v299_v14 = vmax.f32 %v297_v10, %v298_v12  ;;  %v305_v15 = vrot.slane %v304_v13, 1  ;;  %v367_v63 = vadd.f32 %v366_v61, %v365_v60 }
  0x5d   : > { %v306_v16 = vmax.f32 %v304_v13, %v305_v15 }
  0x5f   : > { %v309_v17 = vcombine.low %v299_v14, %v306_v16 }
  0x61   : > { %v311_v18 = vsub.f32 %v286_v1, %v309_v17 }
  0x63   : > { %v312_v19 = vmul.f32 1.442695, %v311_v18 }
  0x65   : > { %595 = vpow2.f32 %v312_v19 }
  0x6f   : > { %v596_v20 = vpop.eup %595 }
  0x70   : > { %v315_v21 = vcombine.high %v596_v20, %v596_v20  ;;  %v317_v22 = vsel %vm292_vm1, %v596_v20, 0.0 }
  0x71   : > { %v318_v23 = vrot.slane %v317_v22, 4 }
  0x72   : > { %v324_v24 = vsel %vm292_vm1, %v315_v21, 0.0 }
  0x73   : > { %v319_v25 = vadd.f32 %v318_v23, %v317_v22  ;;  %v325_v26 = vrot.slane %v324_v24, 4 }
  0x75   : > { %v320_v27 = vrot.slane %v319_v25, 2  ;;  %v326_v28 = vadd.f32 %v325_v26, %v324_v24 }
  0x77   : > { %v321_v29 = vadd.f32 %v320_v27, %v319_v25  ;;  %v327_v30 = vrot.slane %v326_v28, 2 }
  0x79   : > { %v322_v31 = vrot.slane %v321_v29, 1  ;;  %v328_v32 = vadd.f32 %v327_v30, %v326_v28 }
  0x7b   : > { %v323_v34 = vadd.f32 %v322_v31, %v321_v29  ;;  %v329_v35 = vrot.slane %v328_v32, 1 }
  0x7d   : > { %v330_v36 = vadd.f32 %v329_v35, %v328_v32 }
  0x7f   : > { %v333_v38 = vcombine.low %v323_v34, %v330_v36 }
  0x81   : > { %597 = vrcp.f32 %v333_v38 }
  0x8b   : > { %v598_v45 = vpop.eup %597 }
  0x8c   : > { %v336_v47 = vmul.f32 %v598_v45, %v596_v20 }
  0x8e   : > { %v350_v49 = vmul.f32 %v348_v44, %v336_v47 }
  0x90   : > { %v356_v51 = vmul.f32 %v350_v49, %v287_v46  ;;  %v371_v53 = vcombine.high %v350_v49, %v350_v49  ;;  %v373_v54 = vsel %vm292_vm1, %v350_v49, 0.0 }
  0x92   : > { %v358_v55 = vcombine.high %v356_v51, %v356_v51  ;;  %v360_v56 = vsel %vm292_vm1, %v356_v51, 0.0  ;;  %v374_v57 = vsel %vm292_vm1, %v371_v53, 0.0 }
  0x93   : > { %v375_v58 = vadd.f32 %v374_v57, %v373_v54 }
  0x94   : > { %v361_v59 = vsel %vm292_vm1, %v358_v55, 0.0 }
  0x95   : > { %v362_v62 = vadd.f32 %v361_v59, %v360_v56  ;;  %376 = vadd.xlane.f32.xlu1 %v375_v58 }
  0x97   : > { %363 = vadd.xlane.f32.xlu0 %v362_v62 }
  0x9b   : > { %368 = vadd.xlane.f32.xlu0 %v367_v63 }
 0x122   : > { %v377_v6 = vpop.xlane.xlu1 %376 }
 0x124   : > { %v364_v1 = vpop.xlane.xlu0 %363 }
 0x125   : > { %v379_v2 = vadd.f32 %v378_v0, %v364_v1 }
 0x127   : > { %381 = vst.msk [vmem:[#allocation2] sm:$0xf] %vm380_vm2, %v379_v2 }
 0x128   : > { %v369_v3 = vpop.xlane.xlu0 %368 }
 0x12e   : > { %v382_v4 = vld [vmem:[#allocation2] sm:$0xf] }
 0x12f   : > { %v383_v5 = vadd.f32 %v382_v4, %v369_v3 }
 0x131   : > { %385 = vst.msk [vmem:[#allocation2] sm:$0xf] %vm384_vm3, %v383_v5 }
 0x138   : > { %v386_v7 = vld [vmem:[#allocation2] sm:$0xf] }
 0x139   : > { %v387_v8 = vadd.f32 %v386_v7, %v377_v6 }
 0x13b   : > { %389 = vst.msk [vmem:[#allocation2] sm:$0xf] %vm388_vm4, %v387_v8 }
 0x142   : > { %v393_v9 = vld [vmem:[#allocation2] sm:$0xf] }
 0x143   : > { %395 = vst.msk [vmem:[%s279_s26] sm:$0xf] %vm284_vm0, %v393_v9 }
 0x144 PF: > { %s19_s17 = sadd.s32 1, %s713_s17   ;;  %s945_s12 = smov %s697_s13 }
 0x145   : > { %p16_p9 = scmp.ge.s32.totalorder %s19_s17, 4   ;;  %s946_s13 = smov %s701_s14 }
 0x146   : > { %s947_s14 = smov %s787_s24  ;;  %s948_s15 = smov %s709_s16 }
 0x147   : > { %s949_s16 = smov %s951_s19  ;;  %18 = sbr.rel (!%p16_p9) target bundleno = 6 (0x6), region = 96 }
 0x14e   :  { %415 = vsyncpa [#allocation4], 1 }
 0x14f   :  { %417 = vsyncpa [#allocation4 + $0x1], 1 }
 0x150   :  { %418 = vsyncpa [#allocation6], 1 }
 0x151   :  { %420 = vsyncpa [#allocation6 + $0x1], 1 }

</bundles_post_ra>
